<compile_context>
chip_gen: v6e
topology: v6e:2x2x1
jax: 0.10.0
libtpu: 0.0.40
codegen_flags: <defaults>
</compile_context>

<pallas_src>
import jax
import jax.numpy as jnp
from jax.experimental import pallas as pl
from jax.experimental.pallas import tpu as pltpu

KH = KW = 3      # kernel_size=3
SH = SW = 3      # stride defaults to kernel_size in PyTorch MaxPool2d
LANE = 128       # TPU lane width


def _maxpool_kernel(x_ref, o_ref):
    # x_ref: (H, W, C_TILE) VMEM block, channels on the lane axis.
    # o_ref: (OH, OW, C_TILE)
    x = x_ref[...]
    H, W, _ = x_ref.shape
    OH, OW, _ = o_ref.shape
    for oh in range(OH):
        ih0 = oh * SH
        khe = min(KH, H - ih0)              # ceil_mode: clip last window rows
        for ow in range(OW):
            iw0 = ow * SW
            kwe = min(KW, W - iw0)          # ceil_mode: clip last window cols
            m = x[ih0:ih0 + 1, iw0:iw0 + 1, :]
            for kh in range(khe):
                for kw in range(kwe):
                    if kh == 0 and kw == 0:
                        continue
                    m = jnp.maximum(
                        m, x[ih0 + kh:ih0 + kh + 1, iw0 + kw:iw0 + kw + 1, :])
            # lane-dense (full C_TILE lanes) store; only OH*OW per block.
            o_ref[oh:oh + 1, ow:ow + 1, :] = m


def maxpool2d_ceil(x, c_tile=None):
    """MaxPool2d(kernel_size=3, stride=3, padding=0, ceil_mode=True), NCHW."""
    N, C, H, W = x.shape
    # ceil_mode output sizes: ceil((H - KH) / SH) + 1
    OH = -(-(H - KH) // SH) + 1
    OW = -(-(W - KW) // SW) + 1
    NC = N * C

    if c_tile is None:
        # Lane-dense channel tile: >=128, <=512. Double-buffered blocks stay
        # tiny (<1 MiB), comfortably inside v7x's 64 MiB VMEM.
        c_tile = min(512, -(-NC // LANE) * LANE)
    NCp = -(-NC // c_tile) * c_tile

    # Layout plumbing: channels-last so N*C sits on the 128-lane axis.
    xt = jnp.transpose(x.reshape(NC, H, W), (1, 2, 0))            # (H, W, NC)
    if NCp != NC:
        # Pad value is irrelevant (padded channels are sliced away).
        xt = jnp.pad(xt, ((0, 0), (0, 0), (0, NCp - NC)))

    grid = (NCp // c_tile,)
    bytes_accessed = (NC * H * W + NC * OH * OW) * x.dtype.itemsize
    out = pl.pallas_call(
        _maxpool_kernel,
        out_shape=jax.ShapeDtypeStruct((OH, OW, NCp), x.dtype),
        grid=grid,
        in_specs=[pl.BlockSpec((H, W, c_tile), lambda i: (0, 0, i))],
        out_specs=pl.BlockSpec((OH, OW, c_tile), lambda i: (0, 0, i)),
        compiler_params=pltpu.CompilerParams(
            dimension_semantics=("parallel",)),   # megacore-shardable axis
        cost_estimate=pl.CostEstimate(
            flops=KH * KW * NC * OH * OW,
            transcendentals=0,
            bytes_accessed=bytes_accessed),
    )(xt)

    y = out[:, :, :NC]                                            # drop channel pad
    return jnp.transpose(y, (2, 0, 1)).reshape(N, C, OH, OW)


def _ref_maxpool(x):
    # pure-JAX reference with PyTorch ceil_mode window clipping
    N, C, H, W = x.shape
    OH = -(-(H - KH) // SH) + 1
    OW = -(-(W - KW) // SW) + 1
    out = jnp.full((N, C, OH, OW), -jnp.inf, x.dtype)
    for oh in range(OH):
        for ow in range(OW):
            win = x[:, :, oh * SH:min(oh * SH + KH, H),
                          ow * SW:min(ow * SW + KW, W)]
            out = out.at[:, :, oh, ow].set(jnp.max(win, axis=(2, 3)))
    return out


if __name__ == "__main__":
    key = jax.random.PRNGKey(0)
    # PyTorch script reshapes its input to (-1, 1, 5, 5); use batch=2.
    x = jax.random.normal(key, (2, 1, 5, 5), dtype=jnp.float32)

    y = maxpool2d_ceil(x)
    y = jax.block_until_ready(y)

    y_ref = _ref_maxpool(x)
    assert y.shape == (2, 1, 2, 2), y.shape
    assert jnp.allclose(y, y_ref), (y, y_ref)
    print("KERNEL_OK")
</pallas_src>

<mosaic_0001>
module attributes {stable_mosaic.version = 11 : i64} {
  func.func @_maxpool_kernel(%arg0: i32, %arg1: memref<5x5x128xf32, #tpu.memory_space<vmem>>, %arg2: memref<2x2x128xf32, #tpu.memory_space<vmem>>) attributes {dimension_semantics = [#tpu.dimension_semantics<parallel>], iteration_bounds = array<i64: 1>, scalar_prefetch = 0 : i64, scratch_operands = 0 : i64, tpu.core_type = #tpu.core_type<tc>, window_params = [{transform_indices = @transform_0, window_bounds = array<i64: 5, 5, 128>}, {transform_indices = @transform_1, window_bounds = array<i64: 2, 2, 128>}]} {
    %c0 = arith.constant 0 : index
    %c0_0 = arith.constant 0 : index
    %c0_1 = arith.constant 0 : index
    %0 = vector.load %arg1[%c0, %c0_0, %c0_1] : memref<5x5x128xf32, #tpu.memory_space<vmem>>, vector<5x5x128xf32>
    %1 = vector.extract_strided_slice %0 {offsets = [0, 0, 0], sizes = [1, 1, 128], strides = [1, 1, 1]} : vector<5x5x128xf32> to vector<1x1x128xf32>
    %2 = vector.extract_strided_slice %0 {offsets = [0, 1, 0], sizes = [1, 1, 128], strides = [1, 1, 1]} : vector<5x5x128xf32> to vector<1x1x128xf32>
    %3 = arith.maximumf %1, %2 : vector<1x1x128xf32>
    %4 = vector.extract_strided_slice %0 {offsets = [0, 2, 0], sizes = [1, 1, 128], strides = [1, 1, 1]} : vector<5x5x128xf32> to vector<1x1x128xf32>
    %5 = arith.maximumf %3, %4 : vector<1x1x128xf32>
    %6 = vector.extract_strided_slice %0 {offsets = [1, 0, 0], sizes = [1, 1, 128], strides = [1, 1, 1]} : vector<5x5x128xf32> to vector<1x1x128xf32>
    %7 = arith.maximumf %5, %6 : vector<1x1x128xf32>
    %8 = vector.extract_strided_slice %0 {offsets = [1, 1, 0], sizes = [1, 1, 128], strides = [1, 1, 1]} : vector<5x5x128xf32> to vector<1x1x128xf32>
    %9 = arith.maximumf %7, %8 : vector<1x1x128xf32>
    %10 = vector.extract_strided_slice %0 {offsets = [1, 2, 0], sizes = [1, 1, 128], strides = [1, 1, 1]} : vector<5x5x128xf32> to vector<1x1x128xf32>
    %11 = arith.maximumf %9, %10 : vector<1x1x128xf32>
    %12 = vector.extract_strided_slice %0 {offsets = [2, 0, 0], sizes = [1, 1, 128], strides = [1, 1, 1]} : vector<5x5x128xf32> to vector<1x1x128xf32>
    %13 = arith.maximumf %11, %12 : vector<1x1x128xf32>
    %14 = vector.extract_strided_slice %0 {offsets = [2, 1, 0], sizes = [1, 1, 128], strides = [1, 1, 1]} : vector<5x5x128xf32> to vector<1x1x128xf32>
    %15 = arith.maximumf %13, %14 : vector<1x1x128xf32>
    %16 = vector.extract_strided_slice %0 {offsets = [2, 2, 0], sizes = [1, 1, 128], strides = [1, 1, 1]} : vector<5x5x128xf32> to vector<1x1x128xf32>
    %17 = arith.maximumf %15, %16 : vector<1x1x128xf32>
    %c0_2 = arith.constant 0 : index
    %c0_3 = arith.constant 0 : index
    %c0_4 = arith.constant 0 : index
    %18 = vector.load %arg2[%c0_2, %c0_3, %c0_4] : memref<2x2x128xf32, #tpu.memory_space<vmem>>, vector<1x1x128xf32>
    tpu.vector_store %arg2[%c0_2, %c0_3, %c0_4], %17 {strides = array<i32>} : memref<2x2x128xf32, #tpu.memory_space<vmem>>, vector<1x1x128xf32>,
    %19 = vector.extract_strided_slice %0 {offsets = [0, 3, 0], sizes = [1, 1, 128], strides = [1, 1, 1]} : vector<5x5x128xf32> to vector<1x1x128xf32>
    %20 = vector.extract_strided_slice %0 {offsets = [0, 4, 0], sizes = [1, 1, 128], strides = [1, 1, 1]} : vector<5x5x128xf32> to vector<1x1x128xf32>
    %21 = arith.maximumf %19, %20 : vector<1x1x128xf32>
    %22 = vector.extract_strided_slice %0 {offsets = [1, 3, 0], sizes = [1, 1, 128], strides = [1, 1, 1]} : vector<5x5x128xf32> to vector<1x1x128xf32>
    %23 = arith.maximumf %21, %22 : vector<1x1x128xf32>
    %24 = vector.extract_strided_slice %0 {offsets = [1, 4, 0], sizes = [1, 1, 128], strides = [1, 1, 1]} : vector<5x5x128xf32> to vector<1x1x128xf32>
    %25 = arith.maximumf %23, %24 : vector<1x1x128xf32>
    %26 = vector.extract_strided_slice %0 {offsets = [2, 3, 0], sizes = [1, 1, 128], strides = [1, 1, 1]} : vector<5x5x128xf32> to vector<1x1x128xf32>
    %27 = arith.maximumf %25, %26 : vector<1x1x128xf32>
    %28 = vector.extract_strided_slice %0 {offsets = [2, 4, 0], sizes = [1, 1, 128], strides = [1, 1, 1]} : vector<5x5x128xf32> to vector<1x1x128xf32>
    %29 = arith.maximumf %27, %28 : vector<1x1x128xf32>
    %c0_5 = arith.constant 0 : index
    %c1 = arith.constant 1 : index
    %c0_6 = arith.constant 0 : index
    %30 = vector.load %arg2[%c0_5, %c1, %c0_6] : memref<2x2x128xf32, #tpu.memory_space<vmem>>, vector<1x1x128xf32>
    tpu.vector_store %arg2[%c0_5, %c1, %c0_6], %29 {strides = array<i32>} : memref<2x2x128xf32, #tpu.memory_space<vmem>>, vector<1x1x128xf32>,
    %31 = vector.extract_strided_slice %0 {offsets = [3, 0, 0], sizes = [1, 1, 128], strides = [1, 1, 1]} : vector<5x5x128xf32> to vector<1x1x128xf32>
    %32 = vector.extract_strided_slice %0 {offsets = [3, 1, 0], sizes = [1, 1, 128], strides = [1, 1, 1]} : vector<5x5x128xf32> to vector<1x1x128xf32>
    %33 = arith.maximumf %31, %32 : vector<1x1x128xf32>
    %34 = vector.extract_strided_slice %0 {offsets = [3, 2, 0], sizes = [1, 1, 128], strides = [1, 1, 1]} : vector<5x5x128xf32> to vector<1x1x128xf32>
    %35 = arith.maximumf %33, %34 : vector<1x1x128xf32>
    %36 = vector.extract_strided_slice %0 {offsets = [4, 0, 0], sizes = [1, 1, 128], strides = [1, 1, 1]} : vector<5x5x128xf32> to vector<1x1x128xf32>
    %37 = arith.maximumf %35, %36 : vector<1x1x128xf32>
    %38 = vector.extract_strided_slice %0 {offsets = [4, 1, 0], sizes = [1, 1, 128], strides = [1, 1, 1]} : vector<5x5x128xf32> to vector<1x1x128xf32>
    %39 = arith.maximumf %37, %38 : vector<1x1x128xf32>
    %40 = vector.extract_strided_slice %0 {offsets = [4, 2, 0], sizes = [1, 1, 128], strides = [1, 1, 1]} : vector<5x5x128xf32> to vector<1x1x128xf32>
    %41 = arith.maximumf %39, %40 : vector<1x1x128xf32>
    %c1_7 = arith.constant 1 : index
    %c0_8 = arith.constant 0 : index
    %c0_9 = arith.constant 0 : index
    %42 = vector.load %arg2[%c1_7, %c0_8, %c0_9] : memref<2x2x128xf32, #tpu.memory_space<vmem>>, vector<1x1x128xf32>
    tpu.vector_store %arg2[%c1_7, %c0_8, %c0_9], %41 {strides = array<i32>} : memref<2x2x128xf32, #tpu.memory_space<vmem>>, vector<1x1x128xf32>,
    %43 = vector.extract_strided_slice %0 {offsets = [3, 3, 0], sizes = [1, 1, 128], strides = [1, 1, 1]} : vector<5x5x128xf32> to vector<1x1x128xf32>
    %44 = vector.extract_strided_slice %0 {offsets = [3, 4, 0], sizes = [1, 1, 128], strides = [1, 1, 1]} : vector<5x5x128xf32> to vector<1x1x128xf32>
    %45 = arith.maximumf %43, %44 : vector<1x1x128xf32>
    %46 = vector.extract_strided_slice %0 {offsets = [4, 3, 0], sizes = [1, 1, 128], strides = [1, 1, 1]} : vector<5x5x128xf32> to vector<1x1x128xf32>
    %47 = arith.maximumf %45, %46 : vector<1x1x128xf32>
    %48 = vector.extract_strided_slice %0 {offsets = [4, 4, 0], sizes = [1, 1, 128], strides = [1, 1, 1]} : vector<5x5x128xf32> to vector<1x1x128xf32>
    %49 = arith.maximumf %47, %48 : vector<1x1x128xf32>
    %c1_10 = arith.constant 1 : index
    %c1_11 = arith.constant 1 : index
    %c0_12 = arith.constant 0 : index
    %50 = vector.load %arg2[%c1_10, %c1_11, %c0_12] : memref<2x2x128xf32, #tpu.memory_space<vmem>>, vector<1x1x128xf32>
    tpu.vector_store %arg2[%c1_10, %c1_11, %c0_12], %49 {strides = array<i32>} : memref<2x2x128xf32, #tpu.memory_space<vmem>>, vector<1x1x128xf32>,
    return
  }
  func.func @transform_0(%arg0: i32) -> (i32, i32, i32) {
    %c0_i32 = arith.constant 0 : i32
    %c0_i32_0 = arith.constant 0 : i32
    %c0_i32_1 = arith.constant 0 : i32
    return %c0_i32, %c0_i32_0, %arg0 : i32, i32, i32
  }
  func.func @transform_1(%arg0: i32) -> (i32, i32, i32) {
    %c0_i32 = arith.constant 0 : i32
    %c0_i32_0 = arith.constant 0 : i32
    %c0_i32_1 = arith.constant 0 : i32
    return %c0_i32, %c0_i32_0, %arg0 : i32, i32, i32
  }
}

</mosaic_0001>

<bundles_post_ra>
// kernel: tpu_custom_call.1
= control target key start
LH: loop header
LB: loop body
LE: loop exit
PB: predicated region body
PF: predicated region fallthrough
CT: control target
= control target key end

     0   :  { %6 = vsyncpa [#allocation3], 0  ;;  %s166_s0 = inlined_call_operand.hbm [shape: f32[5,5,128], index: 0, kind: input, shape index: {}]   ;;  %s167_s1 = inlined_call_operand.hbm [shape: f32[2,2,128], index: 1, kind: output, shape index: {}]  }
   0x1   :  { %7 = vsyncpa [#allocation4], 0  ;;  %s144_s6 = smov [#allocation2]  }
   0x2   :  { %s13_s7 = sshll.u32 %s144_s6, 4  ;;  %s14_s7 = int_to_ptr.vmem [resolvable:$true] %s13_s7 }
   0x3   :  { %s108_s8 = scalar_lea.vmem %s14_s7, 640  ;;  %p113_p1 = scmp.lt.s32.totalorder %s14_s7, %s14_s7 }
   0x4   :  { %p109_p0 = scmp.ne.s32.totalorder %s14_s7, %s108_s8  ;;  %p114_p2 = scmp.lt.s32.totalorder %s108_s8, %s108_s8 }
   0x6   :  { %p115_p3 = por %p114_p2, %p113_p1 }
   0x8   :  { %p116_p4 = pnand %p115_p3, %p109_p0 }
   0xa   :  { %119 = shalt.err (!%p116_p4)
}
   0xb   :  { %s145_s9 = smov 128   ;;  %s146_s10 = smov 8  }
   0xc   :  { %19 = dma.hbm_to_vmem [thread:$0]  %s166_s0, 640, %s14_s7, [#allocation3], %s145_s9, %s145_s9, %s146_s10  }
   0xd   :  { %140 = dma.done.wait [#allocation3], 640  }
   0xe   :  { %141 = vsyncadd [#allocation3], 4294966656  ;;  %v23_v0 = vld [vmem:[#allocation2] sm:$0x1f]  ;;  %v26_v3 = vld [vmem:[#allocation2 + $0x18] sm:$0x1f] }
   0xf   :  { %v29_v1 = vrot.slane %v23_v0, 1  ;;  %v32_v2 = vrot.slane %v23_v0, 2  ;;  %v24_v4 = vld [vmem:[#allocation2 + $0x8] sm:$0x1f]  ;;  %v58_v5 = vrot.slane %v26_v3, 1  ;;  %v61_v6 = vrot.slane %v26_v3, 2 }
  0x10   :  { %v27_v8 = vld [vmem:[#allocation2 + $0x20] sm:$0x1f]  ;;  %v37_v11 = vrot.slane %v24_v4, 1  ;;  %v25_v13 = vld [vmem:[#allocation2 + $0x10] sm:$0x1f]  ;;  %v40_v18 = vrot.slane %v24_v4, 2 }
  0x11   :  { %v31_v7 = vmax.f32 %v23_v0, %v29_v1  ;;  %v60_v9 = vmax.f32 %v26_v3, %v58_v5  ;;  %v66_v15 = vrot.slane %v27_v8, 1  ;;  %v69_v21 = vrot.slane %v27_v8, 2  ;;  %s147_s0 = smov [#allocation5]  }
  0x12   :  { %v45_v24 = vrot.slane %v25_v13, 1  ;;  %v48_v31 = vrot.slane %v25_v13, 2  ;;  %s82_s13 = sshll.u32 %s147_s0, 4  ;;  %s83_s13 = int_to_ptr.vmem [resolvable:$true] %s82_s13 }
  0x13   :  { %v34_v10 = vmax.f32 %v31_v7, %v32_v2  ;;  %v52_v12 = vmax.f32 %v31_v7, %v24_v4  ;;  %v63_v14 = vmax.f32 %v60_v9, %v61_v6  ;;  %v74_v16 = vmax.f32 %v60_v9, %v27_v8  ;;  %s120_s14 = scalar_lea.vmem %s83_s13, 64  ;;  %p125_p6 = scmp.lt.s32.totalorder %s83_s13, %s83_s13 }
  0x14   :  { %p121_p5 = scmp.ne.s32.totalorder %s83_s13, %s120_s14  ;;  %p126_p7 = scmp.lt.s32.totalorder %s120_s14, %s120_s14 }
  0x15   :  { %v35_v17 = vmax.f32 %v34_v10, %v24_v4  ;;  %v53_v19 = vmax.f32 %v52_v12, %v37_v11  ;;  %v64_v20 = vmax.f32 %v63_v14, %v27_v8  ;;  %v75_v22 = vmax.f32 %v74_v16, %v66_v15 }
  0x16   :  { %p127_p8 = por %p126_p7, %p125_p6 }
  0x17   :  { %v39_v23 = vmax.f32 %v35_v17, %v37_v11  ;;  %v54_v25 = vmax.f32 %v53_v19, %v25_v13  ;;  %v68_v26 = vmax.f32 %v64_v20, %v66_v15  ;;  %76 = vst [vmem:[#allocation5] sm:$0x8] %v75_v22 }
  0x18   :  { %p128_p9 = pnand %p127_p8, %p121_p5 }
  0x19   :  { %v42_v27 = vmax.f32 %v39_v23, %v40_v18  ;;  %v55_v28 = vmax.f32 %v54_v25, %v45_v24  ;;  %v71_v29 = vmax.f32 %v68_v26, %v69_v21 }
  0x1b   :  { %v43_v30 = vmax.f32 %v42_v27, %v25_v13  ;;  %56 = vst [vmem:[#allocation5 - $0x2] sm:$0x8] %v55_v28  ;;  %73 = vst [vmem:[#allocation5 + $0x2] sm:$0x1] %v71_v29 }
  0x1d   :  { %v47_v32 = vmax.f32 %v43_v30, %v45_v24 }
  0x1f   :  { %v50_v33 = vmax.f32 %v47_v32, %v48_v31 }
  0x21   :  { %51 = vst [vmem:[#allocation5] sm:$0x1] %v50_v33 }
  0x22   :  { %131 = shalt.err (!%p128_p9)
}
  0x23   :  { %s148_s15 = smov 32   ;;  %s149_s16 = smov 2  }
  0x24   :  { %88 = dma.vmem_to_hbm [thread:$0]  %s83_s13, 64, %s167_s1, [#allocation4], %s148_s15, %s148_s15, %s149_s16  }
  0x25   :  { %142 = dma.done.wait [#allocation4], 64  }
  0x26   :  { %143 = vsyncadd [#allocation4], 4294967232 }
  0x27   :  { %92 = vsyncpa [#allocation3], 1 }
  0x28   :  { %93 = vsyncpa [#allocation4], 1 }

</bundles_post_ra>
